<compile_context>
chip_gen: v6e
topology: v6e:2x2x1
jax: 0.10.0
libtpu: 0.0.40
codegen_flags: <defaults>
</compile_context>

<pallas_src>
import functools

import jax
import jax.numpy as jnp
from jax import lax
from jax.experimental import pallas as pl
from jax.experimental.pallas import tpu as pltpu

LN_EPS = 1e-5


def _layernorm(x, gamma, beta):
    # PyTorch nn.LayerNorm over the last dim (biased variance, eps=1e-5).
    mu = jnp.mean(x, axis=-1, keepdims=True)
    var = jnp.mean((x - mu) ** 2, axis=-1, keepdims=True)
    return (x - mu) / jnp.sqrt(var + LN_EPS) * gamma + beta


def _make_kernel(head_dim, batch_block, seq_len, use_bf16):
    """Build the Pallas kernel body (all args are Python/static)."""
    inv_d = 1.0 / float(head_dim)
    N = seq_len
    mm_dtype = jnp.bfloat16 if use_bf16 else jnp.float32

    def mm(a, b, contract=None):
        # MXU matmul with f32 accumulation; optionally feeds the MXU in bf16.
        a = a.astype(mm_dtype)
        b = b.astype(mm_dtype)
        if contract is None:
            return jnp.dot(a, b, preferred_element_type=jnp.float32)
        return lax.dot_general(a, b, dimension_numbers=(contract, ((), ())),
                               preferred_element_type=jnp.float32)

    def kernel(v_ref, w_ref, ln_ref, mask_ref, wo_ref, bo_ref, o_ref):
        # Grid-invariant operands (constant index_maps -> DMA'd only once).
        wq = w_ref[0]                      # (C+1, HD)   bias row appended
        wk = w_ref[1]
        wv = w_ref[2]
        gq, bgq, gk, bgk = ln_ref[0], ln_ref[1], ln_ref[2], ln_ref[3]   # (HD,) each
        mask = mask_ref[...]               # (HD, HD) block-diagonal head mask (f32)
        wo = wo_ref[...]                   # (HD, D_out), pre-scaled by 1/N
        bo = bo_ref[...]                   # (1, D_out),  pre-scaled by 1/N

        # Whole batch block at once: (BT*N, C+1).
        x = v_ref[...]

        q = mm(x, wq)                      # (BT*N, HD)  -- all heads, all batches
        k = mm(x, wk)
        vproj = mm(x, wv)

        def per_head_layernorm(t, gamma, beta):
            # Per-head mean / biased-variance: one block-diagonal matmul does the
            # within-head sum AND the broadcast back to (BT*N, HD).  LayerNorm
            # math stays in f32 for accuracy; rsqrt goes to the EUP (free slot).
            mean_b = jnp.dot(t, mask, preferred_element_type=jnp.float32) * inv_d
            xc = t - mean_b
            var_b = jnp.dot(xc * xc, mask,
                            preferred_element_type=jnp.float32) * inv_d
            return xc * lax.rsqrt(var_b + LN_EPS) * gamma + beta

        q = per_head_layernorm(q, gq, bgq)
        k = per_head_layernorm(k, gk, bgk)

        # Softmax-free attention => reassociate (Q K^T) V as Q (K^T V).
        # K^T V is inherently per batch element -> tiny static unroll; the
        # (HD, HD) contraction over N, masked block-diagonal, replaces H separate
        # (N, N) attention maps (no O(N^2) VMEM, no transposes).
        for b in range(batch_block):
            lo, hi = b * N, (b + 1) * N     # static slice bounds
            qb = q[lo:hi, :]
            kb = k[lo:hi, :]
            vb = vproj[lo:hi, :]

            kv = mm(kb, vb, contract=((0,), (0,))) * mask      # (HD, HD)
            h = mm(qb, kv)                                     # (N, HD)
            out = mm(h, wo) + bo                               # (N, D_out); 1/N folded
            o_ref[lo:hi, :] = out.astype(o_ref.dtype)

    return kernel


def fourier_attention_1d(v, params, *, nhead, out_channels, use_bf16=False):
    """v: (B, N, C_in) float32.  params: dict of flat (PyTorch-style) weights."""
    B, N, C = v.shape
    H, D = nhead, out_channels
    HD = H * D
    f32 = jnp.float32

    # ---- wrapper-side repacking (cheap, fused by XLA, done once per call) ----
    # Fold Linear biases into the projection matmuls via a ones column on x,
    # and flatten (B, N) -> rows so projections/LayerNorm fuse across the batch.
    v_aug = jnp.concatenate([v.astype(f32), jnp.ones((B, N, 1), f32)], axis=-1)
    v_flat = v_aug.reshape(B * N, C + 1)

    def aug(wname, bname):                # (C, HD) + (HD,) -> (C+1, HD)
        return jnp.concatenate(
            [params[wname].astype(f32), params[bname].astype(f32)[None, :]], axis=0)

    w_qkv = jnp.stack([aug("wq", "bq"), aug("wk", "bk"), aug("wv", "bv")])   # (3,C+1,HD)

    # einops '(h d)' grouping is head-major, so reshape(HD) keeps the mapping.
    ln_pack = jnp.stack([params["gq"].reshape(HD), params["bgq"].reshape(HD),
                         params["gk"].reshape(HD), params["bgk"].reshape(HD)]
                        ).astype(f32)                                        # (4, HD)

    head_id = jnp.arange(HD, dtype=jnp.int32) // D
    blockmask = (head_id[:, None] == head_id[None, :]).astype(f32)           # (HD, HD)

    # Fold the final 1/n (logical sequence length N) into the output projection.
    wo_s = params["wo"].astype(f32) / N                    # (HD, D_out)
    bo_s = (params["bo"].astype(f32) / N)[None, :]         # (1, D_out)

    # Batch blocking: several batch elements per grid step amortize the fixed
    # per-step pipeline cost.  A partial flat block needs (BT*N) % 8 == 0 for the
    # sublane constraint; otherwise fall back to the full-array block.
    BT = B
    for cand in (8, 4, 2, 1):
        if cand <= B and B % cand == 0 and (cand * N) % 8 == 0:
            BT = cand
            break

    kernel = _make_kernel(D, BT, N, use_bf16)

    out_flat = pl.pallas_call(
        kernel,
        out_shape=jax.ShapeDtypeStruct((B * N, D), v.dtype),
        grid=(B // BT,),
        in_specs=[
            pl.BlockSpec((BT * N, C + 1), lambda b: (b, 0)),   # activations (flat)
            pl.BlockSpec((3, C + 1, HD), lambda b: (0, 0, 0)),  # fused QKV weights+bias
            pl.BlockSpec((4, HD), lambda b: (0, 0)),            # LN gamma/beta (Q,K)
            pl.BlockSpec((HD, HD), lambda b: (0, 0)),           # block-diagonal mask
            pl.BlockSpec((HD, D), lambda b: (0, 0)),            # oproj weight (/N)
            pl.BlockSpec((1, D), lambda b: (0, 0)),             # oproj bias (/N)
        ],
        out_specs=pl.BlockSpec((BT * N, D), lambda b: (b, 0)),
        compiler_params=pltpu.CompilerParams(
            dimension_semantics=("parallel",),
            vmem_limit_bytes=32 * 1024 * 1024),
    )(v_flat, w_qkv, ln_pack, blockmask, wo_s, bo_s)

    return out_flat.reshape(B, N, D)


def reference_forward(v, params, *, nhead, out_channels):
    """Plain-JAX transcription of the PyTorch forward, for verification."""
    B, N, C = v.shape
    H, D = nhead, out_channels

    Q = v @ params["wq"] + params["bq"]
    K = v @ params["wk"] + params["bk"]
    V = v @ params["wv"] + params["bv"]

    def split(t):   # 'b l (h d) -> b h l d'
        return t.reshape(B, N, H, D).transpose(0, 2, 1, 3)

    Q, K, V = split(Q), split(K), split(V)
    Q = jnp.stack([_layernorm(Q[:, i], params["gq"][i], params["bgq"][i])
                   for i in range(H)], axis=1)
    K = jnp.stack([_layernorm(K[:, i], params["gk"][i], params["bgk"][i])
                   for i in range(H)], axis=1)

    attn = jnp.einsum("bhmd,bhnd->bhmn", Q, K)
    out = jnp.einsum("bhmn,bhnd->bhmd", attn, V)
    out = out.transpose(0, 2, 1, 3).reshape(B, N, H * D)     # 'b h l d -> b l (h d)'
    out = out @ params["wo"] + params["bo"]
    return out / N


def make_params(key, in_channels, out_channels, nhead):
    H, D, C = nhead, out_channels, in_channels
    ks = jax.random.split(key, 8)
    scale_in = 1.0 / jnp.sqrt(C)
    scale_hd = 1.0 / jnp.sqrt(H * D)
    return {
        # stored as (in, out) so y = x @ W + b  (deterministic synthetic init)
        "wq": jax.random.normal(ks[0], (C, H * D), jnp.float32) * scale_in,
        "bq": jax.random.normal(ks[1], (H * D,), jnp.float32) * 0.1,
        "wk": jax.random.normal(ks[2], (C, H * D), jnp.float32) * scale_in,
        "bk": jax.random.normal(ks[3], (H * D,), jnp.float32) * 0.1,
        "wv": jax.random.normal(ks[4], (C, H * D), jnp.float32) * scale_in,
        "bv": jax.random.normal(ks[5], (H * D,), jnp.float32) * 0.1,
        "wo": jax.random.normal(ks[6], (H * D, D), jnp.float32) * scale_hd,
        "bo": jax.random.normal(ks[7], (D,), jnp.float32) * 0.1,
        # LayerNorm params (perturbed from the PyTorch default init so the test
        # actually exercises them)
        "gq": jnp.ones((H, D), jnp.float32) + 0.05 * jnp.arange(H * D, dtype=jnp.float32).reshape(H, D) / (H * D),
        "bgq": 0.02 * jnp.arange(H * D, dtype=jnp.float32).reshape(H, D) / (H * D),
        "gk": jnp.ones((H, D), jnp.float32) - 0.03 * jnp.arange(H * D, dtype=jnp.float32).reshape(H, D) / (H * D),
        "bgk": -0.01 * jnp.arange(H * D, dtype=jnp.float32).reshape(H, D) / (H * D),
    }


if __name__ == "__main__":
    B, N, C_IN, C_OUT, NHEAD = 2, 16, 8, 8, 5

    key = jax.random.PRNGKey(0)
    k_v, k_p = jax.random.split(key)
    v = jax.random.normal(k_v, (B, N, C_IN), jnp.float32)
    params = make_params(k_p, C_IN, C_OUT, NHEAD)

    # f32 path (default): matches the reference within fp reassociation noise.
    run = jax.jit(functools.partial(fourier_attention_1d,
                                    nhead=NHEAD, out_channels=C_OUT))
    out = jax.block_until_ready(run(v, params))

    ref = jax.block_until_ready(
        reference_forward(v, params, nhead=NHEAD, out_channels=C_OUT))

    assert out.shape == (B, N, C_OUT), out.shape
    assert jnp.allclose(out, ref, atol=1e-3, rtol=1e-3), (
        float(jnp.max(jnp.abs(out - ref))))

    # bf16-MXU path (recommended on v6e/v7x): f32 accumulation + f32 LayerNorm,
    # checked at a tolerance appropriate for bf16 inputs.
    run_bf16 = jax.jit(functools.partial(fourier_attention_1d, nhead=NHEAD,
                                         out_channels=C_OUT, use_bf16=True))
    out_bf16 = jax.block_until_ready(run_bf16(v, params))
    assert jnp.allclose(out_bf16, ref, atol=1.5e-1, rtol=1.5e-1), (
        float(jnp.max(jnp.abs(out_bf16 - ref))))

    print("KERNEL_OK")
</pallas_src>

<mosaic_0001>
module attributes {stable_mosaic.version = 11 : i64} {
  func.func @kernel(%arg0: i32, %arg1: memref<32x9xf32, #tpu.memory_space<vmem>>, %arg2: memref<3x9x40xf32, #tpu.memory_space<vmem>>, %arg3: memref<4x40xf32, #tpu.memory_space<vmem>>, %arg4: memref<40x40xf32, #tpu.memory_space<vmem>>, %arg5: memref<40x8xf32, #tpu.memory_space<vmem>>, %arg6: memref<1x8xf32, #tpu.memory_space<vmem>>, %arg7: memref<32x8xf32, #tpu.memory_space<vmem>>) attributes {dimension_semantics = [#tpu.dimension_semantics<parallel>], iteration_bounds = array<i64: 1>, scalar_prefetch = 0 : i64, scratch_operands = 0 : i64, tpu.core_type = #tpu.core_type<tc>, window_params = [{transform_indices = @transform_0, window_bounds = array<i64: 32, 9>}, {pipeline_mode = #tpu.pipeline_mode<synchronous>, transform_indices = @transform_1, window_bounds = array<i64: 3, 9, 40>}, {pipeline_mode = #tpu.pipeline_mode<synchronous>, transform_indices = @transform_2, window_bounds = array<i64: 4, 40>}, {pipeline_mode = #tpu.pipeline_mode<synchronous>, transform_indices = @transform_3, window_bounds = array<i64: 40, 40>}, {pipeline_mode = #tpu.pipeline_mode<synchronous>, transform_indices = @transform_4, window_bounds = array<i64: 40, 8>}, {pipeline_mode = #tpu.pipeline_mode<synchronous>, transform_indices = @transform_5, window_bounds = array<i64: 1, 8>}, {transform_indices = @transform_6, window_bounds = array<i64: 32, 8>}]} {
    %c0 = arith.constant 0 : index
    %c0_0 = arith.constant 0 : index
    %c0_1 = arith.constant 0 : index
    %0 = vector.load %arg2[%c0, %c0_0, %c0_1] : memref<3x9x40xf32, #tpu.memory_space<vmem>>, vector<1x9x40xf32>
    %1 = vector.shape_cast %0 : vector<1x9x40xf32> to vector<9x40xf32>
    %c1 = arith.constant 1 : index
    %c0_2 = arith.constant 0 : index
    %c0_3 = arith.constant 0 : index
    %2 = vector.load %arg2[%c1, %c0_2, %c0_3] : memref<3x9x40xf32, #tpu.memory_space<vmem>>, vector<1x9x40xf32>
    %3 = vector.shape_cast %2 : vector<1x9x40xf32> to vector<9x40xf32>
    %c2 = arith.constant 2 : index
    %c0_4 = arith.constant 0 : index
    %c0_5 = arith.constant 0 : index
    %4 = vector.load %arg2[%c2, %c0_4, %c0_5] : memref<3x9x40xf32, #tpu.memory_space<vmem>>, vector<1x9x40xf32>
    %5 = vector.shape_cast %4 : vector<1x9x40xf32> to vector<9x40xf32>
    %c0_6 = arith.constant 0 : index
    %c0_7 = arith.constant 0 : index
    %6 = vector.load %arg3[%c0_6, %c0_7] : memref<4x40xf32, #tpu.memory_space<vmem>>, vector<1x40xf32>
    %7 = vector.shape_cast %6 : vector<1x40xf32> to vector<40xf32>
    %c1_8 = arith.constant 1 : index
    %c0_9 = arith.constant 0 : index
    %8 = vector.load %arg3[%c1_8, %c0_9] : memref<4x40xf32, #tpu.memory_space<vmem>>, vector<1x40xf32>
    %9 = vector.shape_cast %8 : vector<1x40xf32> to vector<40xf32>
    %c2_10 = arith.constant 2 : index
    %c0_11 = arith.constant 0 : index
    %10 = vector.load %arg3[%c2_10, %c0_11] : memref<4x40xf32, #tpu.memory_space<vmem>>, vector<1x40xf32>
    %11 = vector.shape_cast %10 : vector<1x40xf32> to vector<40xf32>
    %c3 = arith.constant 3 : index
    %c0_12 = arith.constant 0 : index
    %12 = vector.load %arg3[%c3, %c0_12] : memref<4x40xf32, #tpu.memory_space<vmem>>, vector<1x40xf32>
    %13 = vector.shape_cast %12 : vector<1x40xf32> to vector<40xf32>
    %c0_13 = arith.constant 0 : index
    %c0_14 = arith.constant 0 : index
    %14 = vector.load %arg4[%c0_13, %c0_14] : memref<40x40xf32, #tpu.memory_space<vmem>>, vector<40x40xf32>
    %c0_15 = arith.constant 0 : index
    %c0_16 = arith.constant 0 : index
    %15 = vector.load %arg5[%c0_15, %c0_16] : memref<40x8xf32, #tpu.memory_space<vmem>>, vector<40x8xf32>
    %c0_17 = arith.constant 0 : index
    %c0_18 = arith.constant 0 : index
    %16 = vector.load %arg6[%c0_17, %c0_18] : memref<1x8xf32, #tpu.memory_space<vmem>>, vector<1x8xf32>
    %c0_19 = arith.constant 0 : index
    %c0_20 = arith.constant 0 : index
    %17 = vector.load %arg1[%c0_19, %c0_20] : memref<32x9xf32, #tpu.memory_space<vmem>>, vector<32x9xf32>
    %cst = arith.constant dense<0.000000e+00> : vector<32x40xf32>
    %18 = tpu.matmul %17, %1, %cst {dimension_numbers = #tpu.dot_dimension_numbers<[1], [0], [0], [1], [0, 0, 1, 1], [], []>} : vector<32x9xf32>, vector<9x40xf32>, vector<32x40xf32> -> vector<32x40xf32>
    %cst_21 = arith.constant dense<0.000000e+00> : vector<32x40xf32>
    %19 = tpu.matmul %17, %3, %cst_21 {dimension_numbers = #tpu.dot_dimension_numbers<[1], [0], [0], [1], [0, 0, 1, 1], [], []>} : vector<32x9xf32>, vector<9x40xf32>, vector<32x40xf32> -> vector<32x40xf32>
    %cst_22 = arith.constant dense<0.000000e+00> : vector<32x40xf32>
    %20 = tpu.matmul %17, %5, %cst_22 {dimension_numbers = #tpu.dot_dimension_numbers<[1], [0], [0], [1], [0, 0, 1, 1], [], []>} : vector<32x9xf32>, vector<9x40xf32>, vector<32x40xf32> -> vector<32x40xf32>
    %cst_23 = arith.constant dense<0.000000e+00> : vector<32x40xf32>
    %21 = tpu.matmul %18, %14, %cst_23 {dimension_numbers = #tpu.dot_dimension_numbers<[1], [0], [0], [1], [0, 0, 1, 1], [], []>} : vector<32x40xf32>, vector<40x40xf32>, vector<32x40xf32> -> vector<32x40xf32>
    %cst_24 = arith.constant 1.250000e-01 : f32
    %22 = vector.broadcast %cst_24 : f32 to vector<32x40xf32>
    %23 = arith.mulf %21, %22 : vector<32x40xf32>
    %24 = arith.subf %18, %23 : vector<32x40xf32>
    %25 = arith.mulf %24, %24 : vector<32x40xf32>
    %cst_25 = arith.constant dense<0.000000e+00> : vector<32x40xf32>
    %26 = tpu.matmul %25, %14, %cst_25 {dimension_numbers = #tpu.dot_dimension_numbers<[1], [0], [0], [1], [0, 0, 1, 1], [], []>} : vector<32x40xf32>, vector<40x40xf32>, vector<32x40xf32> -> vector<32x40xf32>
    %cst_26 = arith.constant 1.250000e-01 : f32
    %27 = vector.broadcast %cst_26 : f32 to vector<32x40xf32>
    %28 = arith.mulf %26, %27 : vector<32x40xf32>
    %cst_27 = arith.constant 9.99999974E-6 : f32
    %29 = vector.broadcast %cst_27 : f32 to vector<32x40xf32>
    %30 = arith.addf %28, %29 : vector<32x40xf32>
    %31 = math.rsqrt %30 : vector<32x40xf32>
    %32 = arith.mulf %24, %31 : vector<32x40xf32>
    %33 = vector.shape_cast %7 : vector<40xf32> to vector<1x40xf32>
    %34 = vector.broadcast %33 : vector<1x40xf32> to vector<32x40xf32>
    %35 = arith.mulf %32, %34 : vector<32x40xf32>
    %36 = vector.shape_cast %9 : vector<40xf32> to vector<1x40xf32>
    %37 = vector.broadcast %36 : vector<1x40xf32> to vector<32x40xf32>
    %38 = arith.addf %35, %37 : vector<32x40xf32>
    %cst_28 = arith.constant dense<0.000000e+00> : vector<32x40xf32>
    %39 = tpu.matmul %19, %14, %cst_28 {dimension_numbers = #tpu.dot_dimension_numbers<[1], [0], [0], [1], [0, 0, 1, 1], [], []>} : vector<32x40xf32>, vector<40x40xf32>, vector<32x40xf32> -> vector<32x40xf32>
    %cst_29 = arith.constant 1.250000e-01 : f32
    %40 = vector.broadcast %cst_29 : f32 to vector<32x40xf32>
    %41 = arith.mulf %39, %40 : vector<32x40xf32>
    %42 = arith.subf %19, %41 : vector<32x40xf32>
    %43 = arith.mulf %42, %42 : vector<32x40xf32>
    %cst_30 = arith.constant dense<0.000000e+00> : vector<32x40xf32>
    %44 = tpu.matmul %43, %14, %cst_30 {dimension_numbers = #tpu.dot_dimension_numbers<[1], [0], [0], [1], [0, 0, 1, 1], [], []>} : vector<32x40xf32>, vector<40x40xf32>, vector<32x40xf32> -> vector<32x40xf32>
    %cst_31 = arith.constant 1.250000e-01 : f32
    %45 = vector.broadcast %cst_31 : f32 to vector<32x40xf32>
    %46 = arith.mulf %44, %45 : vector<32x40xf32>
    %cst_32 = arith.constant 9.99999974E-6 : f32
    %47 = vector.broadcast %cst_32 : f32 to vector<32x40xf32>
    %48 = arith.addf %46, %47 : vector<32x40xf32>
    %49 = math.rsqrt %48 : vector<32x40xf32>
    %50 = arith.mulf %42, %49 : vector<32x40xf32>
    %51 = vector.shape_cast %11 : vector<40xf32> to vector<1x40xf32>
    %52 = vector.broadcast %51 : vector<1x40xf32> to vector<32x40xf32>
    %53 = arith.mulf %50, %52 : vector<32x40xf32>
    %54 = vector.shape_cast %13 : vector<40xf32> to vector<1x40xf32>
    %55 = vector.broadcast %54 : vector<1x40xf32> to vector<32x40xf32>
    %56 = arith.addf %53, %55 : vector<32x40xf32>
    %57 = vector.extract_strided_slice %38 {offsets = [0, 0], sizes = [16, 40], strides = [1, 1]} : vector<32x40xf32> to vector<16x40xf32>
    %58 = vector.extract_strided_slice %56 {offsets = [0, 0], sizes = [16, 40], strides = [1, 1]} : vector<32x40xf32> to vector<16x40xf32>
    %59 = vector.extract_strided_slice %20 {offsets = [0, 0], sizes = [16, 40], strides = [1, 1]} : vector<32x40xf32> to vector<16x40xf32>
    %cst_33 = arith.constant dense<0.000000e+00> : vector<40x40xf32>
    %60 = tpu.matmul %58, %59, %cst_33 {dimension_numbers = #tpu.dot_dimension_numbers<[0], [0], [1], [1], [0, 1, 1, 1], [], []>} : vector<16x40xf32>, vector<16x40xf32>, vector<40x40xf32> -> vector<40x40xf32>
    %61 = arith.mulf %60, %14 : vector<40x40xf32>
    %cst_34 = arith.constant dense<0.000000e+00> : vector<16x40xf32>
    %62 = tpu.matmul %57, %61, %cst_34 {dimension_numbers = #tpu.dot_dimension_numbers<[1], [0], [0], [1], [0, 0, 1, 1], [], []>} : vector<16x40xf32>, vector<40x40xf32>, vector<16x40xf32> -> vector<16x40xf32>
    %cst_35 = arith.constant dense<0.000000e+00> : vector<16x8xf32>
    %63 = tpu.matmul %62, %15, %cst_35 {dimension_numbers = #tpu.dot_dimension_numbers<[1], [0], [0], [1], [0, 0, 1, 1], [], []>} : vector<16x40xf32>, vector<40x8xf32>, vector<16x8xf32> -> vector<16x8xf32>
    %64 = vector.broadcast %16 : vector<1x8xf32> to vector<16x8xf32>
    %65 = arith.addf %63, %64 : vector<16x8xf32>
    %c0_36 = arith.constant 0 : index
    %c0_37 = arith.constant 0 : index
    %66 = vector.load %arg7[%c0_36, %c0_37] : memref<32x8xf32, #tpu.memory_space<vmem>>, vector<16x8xf32>
    tpu.vector_store %arg7[%c0_36, %c0_37], %65 {strides = array<i32>} : memref<32x8xf32, #tpu.memory_space<vmem>>, vector<16x8xf32>,
    %67 = vector.extract_strided_slice %38 {offsets = [16, 0], sizes = [16, 40], strides = [1, 1]} : vector<32x40xf32> to vector<16x40xf32>
    %68 = vector.extract_strided_slice %56 {offsets = [16, 0], sizes = [16, 40], strides = [1, 1]} : vector<32x40xf32> to vector<16x40xf32>
    %69 = vector.extract_strided_slice %20 {offsets = [16, 0], sizes = [16, 40], strides = [1, 1]} : vector<32x40xf32> to vector<16x40xf32>
    %cst_38 = arith.constant dense<0.000000e+00> : vector<40x40xf32>
    %70 = tpu.matmul %68, %69, %cst_38 {dimension_numbers = #tpu.dot_dimension_numbers<[0], [0], [1], [1], [0, 1, 1, 1], [], []>} : vector<16x40xf32>, vector<16x40xf32>, vector<40x40xf32> -> vector<40x40xf32>
    %71 = arith.mulf %70, %14 : vector<40x40xf32>
    %cst_39 = arith.constant dense<0.000000e+00> : vector<16x40xf32>
    %72 = tpu.matmul %67, %71, %cst_39 {dimension_numbers = #tpu.dot_dimension_numbers<[1], [0], [0], [1], [0, 0, 1, 1], [], []>} : vector<16x40xf32>, vector<40x40xf32>, vector<16x40xf32> -> vector<16x40xf32>
    %cst_40 = arith.constant dense<0.000000e+00> : vector<16x8xf32>
    %73 = tpu.matmul %72, %15, %cst_40 {dimension_numbers = #tpu.dot_dimension_numbers<[1], [0], [0], [1], [0, 0, 1, 1], [], []>} : vector<16x40xf32>, vector<40x8xf32>, vector<16x8xf32> -> vector<16x8xf32>
    %74 = vector.broadcast %16 : vector<1x8xf32> to vector<16x8xf32>
    %75 = arith.addf %73, %74 : vector<16x8xf32>
    %c16 = arith.constant 16 : index
    %c0_41 = arith.constant 0 : index
    %76 = vector.load %arg7[%c16, %c0_41] : memref<32x8xf32, #tpu.memory_space<vmem>>, vector<16x8xf32>
    tpu.vector_store %arg7[%c16, %c0_41], %75 {strides = array<i32>} : memref<32x8xf32, #tpu.memory_space<vmem>>, vector<16x8xf32>,
    return
  }
  func.func @transform_0(%arg0: i32) -> (i32, i32) {
    %c0_i32 = arith.constant 0 : i32
    %c0_i32_0 = arith.constant 0 : i32
    return %arg0, %c0_i32 : i32, i32
  }
  func.func @transform_1(%arg0: i32) -> (i32, i32, i32) {
    %c0_i32 = arith.constant 0 : i32
    %c0_i32_0 = arith.constant 0 : i32
    %c0_i32_1 = arith.constant 0 : i32
    %c0_i32_2 = arith.constant 0 : i32
    return %c0_i32, %c0_i32_0, %c0_i32_1 : i32, i32, i32
  }
  func.func @transform_2(%arg0: i32) -> (i32, i32) {
    %c0_i32 = arith.constant 0 : i32
    %c0_i32_0 = arith.constant 0 : i32
    %c0_i32_1 = arith.constant 0 : i32
    return %c0_i32, %c0_i32_0 : i32, i32
  }
  func.func @transform_3(%arg0: i32) -> (i32, i32) {
    %c0_i32 = arith.constant 0 : i32
    %c0_i32_0 = arith.constant 0 : i32
    %c0_i32_1 = arith.constant 0 : i32
    return %c0_i32, %c0_i32_0 : i32, i32
  }
  func.func @transform_4(%arg0: i32) -> (i32, i32) {
    %c0_i32 = arith.constant 0 : i32
    %c0_i32_0 = arith.constant 0 : i32
    %c0_i32_1 = arith.constant 0 : i32
    return %c0_i32, %c0_i32_0 : i32, i32
  }
  func.func @transform_5(%arg0: i32) -> (i32, i32) {
    %c0_i32 = arith.constant 0 : i32
    %c0_i32_0 = arith.constant 0 : i32
    %c0_i32_1 = arith.constant 0 : i32
    return %c0_i32, %c0_i32_0 : i32, i32
  }
  func.func @transform_6(%arg0: i32) -> (i32, i32) {
    %c0_i32 = arith.constant 0 : i32
    %c0_i32_0 = arith.constant 0 : i32
    return %arg0, %c0_i32 : i32, i32
  }
}

</mosaic_0001>

<bundles_post_ra>
// kernel: fourier_attention_1d.1
= control target key start
LH: loop header
LB: loop body
LE: loop exit
PB: predicated region body
PF: predicated region fallthrough
CT: control target
= control target key end

     0   :  { %vm63_vm0 = vcmask 1040384   ;;  %vm50_vm1 = vcmask 72704   ;;  %vm328_vm2 = vcmask 326656   ;;  %v1785_v24 = vmov 0.0   ;;  %s2100_s1 = inlined_call_operand.vmem [shape: f32[3,9,40], index: 1, kind: input, shape index: {}]   ;;  %s2101_s0 = inlined_call_operand.vmem [shape: f32[32,9], index: 0, kind: input, shape index: {}]   ;;  %s2102_s3 = inlined_call_operand.vmem [shape: f32[40,40], index: 3, kind: input, shape index: {}]   ;;  %s2103_s2 = inlined_call_operand.vmem [shape: f32[4,40], index: 2, kind: input, shape index: {}]   ;;  %s2104_s4 = inlined_call_operand.vmem [shape: f32[40,8], index: 4, kind: input, shape index: {}]   ;;  %s2105_s5 = inlined_call_operand.vmem [shape: f32[1,8], index: 5, kind: input, shape index: {}]   ;;  %s2106_s6 = inlined_call_operand.vmem [shape: f32[32,8], index: 6, kind: output, shape index: {}]  }
   0x1   :  { %v24_v0 = vld [vmem:[%s2100_s1 + $0x8] sm:$0x1]  ;;  %v23_v1 = vld [vmem:[%s2100_s1] sm:$0xff]  ;;  %v1430_v3 = vld [vmem:[%s2100_s1 + $0x18] sm:$0x1]  ;;  %vm1786_vm3 = vmmov 0  }
   0x2   :  { %v46_v2 = vld [vmem:[%s2101_s0] sm:$0xff]  ;;  %1583 = vmatprep.subr.msk.mxu0 %vm63_vm0, %v24_v0  ;;  %v47_v4 = vld [vmem:[%s2101_s0 + $0x8] sm:$0xff]  ;;  %1593 = vmatprep.subr.msk.mxu1 %vm63_vm0, %v1430_v3  ;;  %v1429_v5 = vld [vmem:[%s2100_s1 + $0x10] sm:$0xff]  ;;  %vm837_vm4 = vcmask 130048   ;;  %vm1116_vm5 = vcmask 64512  }
   0x3   :  { %1587 = vmatprep.mubr.msk.f32.mxu0 %vm50_vm1, %v46_v2  ;;  %1584 = vmatpush3.msk.msra.mxu0 %vm63_vm0, %v24_v0  ;;  %v48_v6 = vld [vmem:[%s2101_s0 + $0x10] sm:$0xff]  ;;  %v1851_v7 = vld [vmem:[%s2102_s3 + $0x20] sm:$0xff]  ;;  %v49_v8 = vld [vmem:[%s2101_s0 + $0x18] sm:$0xff] }
   0x4   :  { %1585 = vmatprep.subr.mxu0 %v23_v1  ;;  %1594 = vmatpush3.msk.msra.mxu1 %vm63_vm0, %v1430_v3  ;;  %v1862_v9 = vld [vmem:[%s2102_s3 + $0x18] sm:$0xff]  ;;  %v1871_v10 = vld [vmem:[%s2102_s3 + $0x10] sm:$0xff]  ;;  %v1879_v11 = vld [vmem:[%s2102_s3 + $0x8] sm:$0xff] }
   0x5   :  { %1586 = vmatpush3.msra.mxu0 %v23_v1  ;;  %1595 = vmatprep.subr.mxu1 %v1429_v5  ;;  %v1890_v12 = vld [vmem:[%s2102_s3] sm:$0xff]  ;;  %v1432_v13 = vld [vmem:[%s2100_s1 + $0x28] sm:$0x1] }
   0x6   :  { %1588 = vmatmul.mubr.msk.f32.vlgmr.msra.gmra.mxu0 %vm50_vm1, %v47_v4  ;;  %1596 = vmatpush3.msra.mxu1 %v1429_v5  ;;  %v1431_v14 = vld [vmem:[%s2100_s1 + $0x20] sm:$0xff] }
   0x7   :  { %1590 = vmatprep.mubr.msk.f32.mxu0 %vm50_vm1, %v48_v6  ;;  %1597 = vmatprep.mubr.msk.f32.mxu1 %vm50_vm1, %v46_v2 }
   0x8   :  { %1598 = vmatmul.mubr.msk.f32.vlgmr.msra.gmra.mxu1 %vm50_vm1, %v47_v4  ;;  %1613 = vmatprep.subr.mxu1 %v1851_v7 }
   0x9   :  { %1600 = vmatprep.mubr.msk.f32.mxu1 %vm50_vm1, %v48_v6  ;;  %1614 = vmatpush3.msra.mxu1 %v1851_v7 }
   0xa   :  { %1591 = vmatmul.mubr.msk.f32.gmra.mxu0 %vm50_vm1, %v49_v8  ;;  %1615 = vmatprep.subr.mxu1 %v1862_v9 }
   0xb   :  { %1616 = vmatpush3.msra.mxu1 %v1862_v9  ;;  %1607 = vmatprep.mubr.msk.f32.mxu0 %vm50_vm1, %v46_v2 }
   0xc   :  { %1601 = vmatmul.mubr.msk.f32.gmra.mxu1 %vm50_vm1, %v49_v8  ;;  %1617 = vmatprep.subr.mxu1 %v1871_v10 }
   0xd   :  { %1618 = vmatpush3.msra.mxu1 %v1871_v10  ;;  %1603 = vmatprep.subr.msk.mxu0 %vm63_vm0, %v1432_v13 }
   0xe   :  { %1619 = vmatprep.subr.mxu1 %v1879_v11  ;;  %1604 = vmatpush3.msk.msra.mxu0 %vm63_vm0, %v1432_v13 }
   0xf   :  { %1620 = vmatpush3.msra.mxu1 %v1879_v11  ;;  %1605 = vmatprep.subr.mxu0 %v1431_v14 }
  0x10   :  { %1621 = vmatprep.subr.mxu1 %v1890_v12  ;;  %1606 = vmatpush3.msra.mxu0 %v1431_v14 }
  0x11   :  { %1622 = vmatpush3.msra.mxu1 %v1890_v12  ;;  %1608 = vmatmul.mubr.msk.f32.vlgmr.msra.gmra.mxu0 %vm50_vm1, %v47_v4 }
  0x12   :  { %1645 = vmatprep.subr.mxu1 %v1851_v7  ;;  %1629 = vmatprep.subr.mxu0 %v1851_v7 }
  0x13   :  { %1630 = vmatpush3.msra.mxu0 %v1851_v7  ;;  %1610 = vmatprep.mubr.msk.f32.mxu0 %vm50_vm1, %v48_v6 }
  0x14   :  { %1631 = vmatprep.subr.mxu0 %v1862_v9 }
  0x15   :  { %1632 = vmatpush3.msra.mxu0 %v1862_v9 }
  0x16   :  { %1633 = vmatprep.subr.mxu0 %v1871_v10  ;;  %1611 = vmatmul.mubr.msk.f32.gmra.mxu0 %vm50_vm1, %v49_v8 }
  0x17   :  { %1634 = vmatpush3.msra.mxu0 %v1871_v10 }
  0x18   :  { %1635 = vmatprep.subr.mxu0 %v1879_v11 }
  0x19   :  { %1636 = vmatpush3.msra.mxu0 %v1879_v11 }
  0x1a   :  { %1637 = vmatprep.subr.mxu0 %v1890_v12 }
  0x1b   :  { %1638 = vmatpush3.msra.mxu0 %v1890_v12 }
  0x1c   :  { %1661 = vmatprep.subr.mxu0 %v1851_v7 }
  0xc6   :  { %v1589_v15 = vpop.f32.mrf.mxu0 }
  0xc8   :  { %v133_v16 = vpop.f32.mrf.mxu0  ;;  %v1599_v17 = vpop.f32.mrf.mxu1 }
  0xc9   :  { %1623 = vmatprep.mubr.msk.f32.mxu1 %vm328_vm2, %v133_v16 }
  0xca   :  { %v1592_v18 = vpop.f32.mrf.mxu0  ;;  %1624 = vmatmul.mubr.msk.f32.vlgmr.msra.gmra.mxu1 %vm328_vm2, %v1589_v15  ;;  %v221_v20 = vpop.f32.mrf.mxu1 }
  0xcb   :  { %1646 = vmatpush3.msra.mxu1 %v1851_v7 }
  0xcc   :  { %1647 = vmatprep.subr.mxu1 %v1862_v9  ;;  %v143_v19 = vpop.f32.mrf.mxu0  ;;  %v1602_v21 = vpop.f32.mrf.mxu1 }
  0xcd   :  { %1648 = vmatpush3.msra.mxu1 %v1862_v9  ;;  %1626 = vmatprep.mubr.msk.f32.mxu1 %vm328_vm2, %v143_v19 }
  0xce   :  { %1649 = vmatprep.subr.mxu1 %v1871_v10  ;;  %1627 = vmatmul.mubr.msk.f32.gmra.mxu1 %vm328_vm2, %v1592_v18  ;;  %v231_v22 = vpop.f32.mrf.mxu1 }
  0xcf   :  { %1650 = vmatpush3.msra.mxu1 %v1871_v10  ;;  %1655 = vmatprep.mubr.msk.f32.mxu1 %vm328_vm2, %v221_v20 }
  0xd0   :  { %1651 = vmatprep.subr.mxu1 %v1879_v11 }
  0xd1   :  { %1652 = vmatpush3.msra.mxu1 %v1879_v11  ;;  %v1609_v23 = vpop.f32.mrf.mxu0 }
  0xd2   :  { %1653 = vmatprep.subr.mxu1 %v1890_v12 }
  0xd3   :  { %1654 = vmatpush3.msra.mxu1 %v1890_v12  ;;  %v309_v25 = vpop.f32.mrf.mxu0 }
  0xd4   :  { %1656 = vmatmul.mubr.msk.f32.vlgmr.msra.gmra.mxu1 %vm328_vm2, %v1599_v17  ;;  %1677 = vmatprep.subr.mxu1 %v1785_v24 }
  0xd5   :  { %1658 = vmatprep.mubr.msk.f32.mxu1 %vm328_vm2, %v231_v22  ;;  %1678 = vmatpush3.msra.mxu1 %v1609_v23 }
  0xd6   :  { %1679 = vmatprep.subr.mxu1 %v1785_v24  ;;  %v1988_v58 = vpop.f32.mrf.mxu0 }
  0xd7   :  { %1680 = vmatpush3.msra.mxu1 %v309_v25 }
  0xd8   :  { %1659 = vmatmul.mubr.msk.f32.gmra.mxu1 %vm328_vm2, %v1602_v21  ;;  %1722 = vmatprep.subr.mxu1 %v1785_v24  ;;  %v1990_v59 = vpop.f32.mrf.mxu0 }
  0xd9   :  { %1681 = vmatprep.mubr.msk.f32.mxu1 %vm1786_vm3, %v1785_v24 }
 0x18a   :  { %v1625_v26 = vpop.f32.mrf.mxu1 }
 0x18b   :  { %v427_v27 = vmul.f32 0.125, %v1625_v26  ;;  %v1456_v26 = vld [vmem:[%s2103_s2] ss:$0 sm:$0xff] }
 0x18c   :  { %v407_v28 = vpop.f32.mrf.mxu1 }
 0x18d   :  { %v426_v29 = vmul.f32 0.125, %v407_v28  ;;  %v1937_v30 = vsub.f32 %v1589_v15, %v427_v27 }
 0x18e   :  { %v1628_v31 = vpop.f32.mrf.mxu1 }
 0x18f   :  { %v1939_v32 = vsub.f32 %v133_v16, %v426_v29  ;;  %v429_v33 = vmul.f32 0.125, %v1628_v31  ;;  %v435_v37 = vmul.f32 %v1937_v30, %v1937_v30  ;;  %v1457_v31 = vld [vmem:[%s2103_s2 + $0x1] ss:$0 sm:$0xff] }
 0x190   :  { %v417_v34 = vpop.f32.mrf.mxu1 }
 0x191   :  { %v434_v35 = vmul.f32 %v1939_v32, %v1939_v32  ;;  %v428_v36 = vmul.f32 0.125, %v417_v34  ;;  %v1945_v38 = vsub.f32 %v1592_v18, %v429_v33 }
 0x193   :  { %v1947_v39 = vsub.f32 %v143_v19, %v428_v36  ;;  %1639 = vmatprep.mubr.msk.f32.mxu0 %vm328_vm2, %v434_v35  ;;  %v437_v43 = vmul.f32 %v1945_v38, %v1945_v38 }
 0x194   :  { %v1657_v40 = vpop.f32.mrf.mxu1  ;;  %1640 = vmatmul.mubr.msk.f32.vlgmr.msra.gmra.mxu0 %vm328_vm2, %v435_v37 }
 0x195   :  { %v436_v41 = vmul.f32 %v1947_v39, %v1947_v39  ;;  %v665_v42 = vmul.f32 0.125, %v1657_v40  ;;  %1662 = vmatpush3.msra.mxu0 %v1851_v7 }
 0x196   :  { %v645_v44 = vpop.f32.mrf.mxu1  ;;  %1663 = vmatprep.subr.mxu0 %v1862_v9 }
 0x197   :  { %v664_v45 = vmul.f32 0.125, %v645_v44  ;;  %1664 = vmatpush3.msra.mxu0 %v1862_v9  ;;  %1642 = vmatprep.mubr.msk.f32.mxu0 %vm328_vm2, %v436_v41  ;;  %v1959_v46 = vsub.f32 %v1599_v17, %v665_v42 }
 0x198   :  { %v1660_v47 = vpop.f32.mrf.mxu1  ;;  %1665 = vmatprep.subr.mxu0 %v1871_v10  ;;  %1643 = vmatmul.mubr.msk.f32.gmra.mxu0 %vm328_vm2, %v437_v43 }
 0x199   :  { %v1963_v48 = vsub.f32 %v221_v20, %v664_v45  ;;  %v667_v49 = vmul.f32 0.125, %v1660_v47  ;;  %1666 = vmatpush3.msra.mxu0 %v1871_v10  ;;  %v673_v53 = vmul.f32 %v1959_v46, %v1959_v46 }
 0x19a   :  { %v655_v50 = vpop.f32.mrf.mxu1  ;;  %1667 = vmatprep.subr.mxu0 %v1879_v11 }
 0x19b   :  { %v672_v51 = vmul.f32 %v1963_v48, %v1963_v48  ;;  %v666_v52 = vmul.f32 0.125, %v655_v50  ;;  %1668 = vmatpush3.msra.mxu0 %v1879_v11  ;;  %v1972_v54 = vsub.f32 %v1602_v21, %v667_v49 }
 0x19c   :  { %1669 = vmatprep.subr.mxu0 %v1890_v12 }
 0x19d   :  { %v1975_v55 = vsub.f32 %v231_v22, %v666_v52  ;;  %1670 = vmatpush3.msra.mxu0 %v1890_v12  ;;  %1671 = vmatprep.mubr.msk.f32.mxu0 %vm328_vm2, %v672_v51  ;;  %v675_v57 = vmul.f32 %v1972_v54, %v1972_v54  ;;  %v1466_v52 = vld [vmem:[%s2103_s2 + $0x2] ss:$0 sm:$0xff] }
 0x19e   :  { %1672 = vmatmul.mubr.msk.f32.vlgmr.msra.gmra.mxu0 %vm328_vm2, %v673_v53 }
 0x19f   :  { %v674_v56 = vmul.f32 %v1975_v55, %v1975_v55 }
 0x1a1   :  { %1674 = vmatprep.mubr.msk.f32.mxu0 %vm328_vm2, %v674_v56  ;;  %v1467_v56 = vld [vmem:[%s2103_s2 + $0x3] ss:$0 sm:$0xff] }
 0x1a2   :  { %1675 = vmatmul.mubr.msk.f32.gmra.mxu0 %vm328_vm2, %v675_v57 }
 0x254   :  { %v1641_v60 = vpop.f32.mrf.mxu0 }
 0x255   :  { %v536_v61 = vmul.f32 0.125, %v1641_v60 }
 0x256   :  { %v516_v62 = vpop.f32.mrf.mxu0 }
 0x257   :  { %v540_v63 = vadd.f32 1e-05, %v536_v61  ;;  %v535_v0 = vmul.f32 0.125, %v516_v62 }
 0x258   :  { %v1644_v1 = vpop.f32.mrf.mxu0 }
 0x259   :  { %1769 = vrsqrt.f32 %v540_v63  ;;  %v539_v2 = vadd.f32 1e-05, %v535_v0  ;;  %v538_v3 = vmul.f32 0.125, %v1644_v1 }
 0x25a   :  { %v526_v4 = vpop.f32.mrf.mxu0 }
 0x25b   :  { %1771 = vrsqrt.f32 %v539_v2  ;;  %v542_v5 = vadd.f32 1e-05, %v538_v3  ;;  %v537_v6 = vmul.f32 0.125, %v526_v4 }
 0x25d   :  { %1773 = vrsqrt.f32 %v542_v5  ;;  %v541_v8 = vadd.f32 1e-05, %v537_v6 }
 0x25e   :  { %v1673_v13 = vpop.f32.mrf.mxu0 }
 0x25f   :  { %1775 = vrsqrt.f32 %v541_v8  ;;  %v774_v14 = vmul.f32 0.125, %v1673_v13 }
 0x260   :  { %v754_v15 = vpop.f32.mrf.mxu0 }
 0x261   :  { %v778_v16 = vadd.f32 1e-05, %v774_v14  ;;  %v773_v17 = vmul.f32 0.125, %v754_v15 }
 0x262   :  { %v1676_v18 = vpop.f32.mrf.mxu0 }
 0x263   :  { %1777 = vrsqrt.f32 %v778_v16  ;;  %v777_v19 = vadd.f32 1e-05, %v773_v17  ;;  %v776_v20 = vmul.f32 0.125, %v1676_v18 }
 0x264   :  { %v764_v21 = vpop.f32.mrf.mxu0 }
 0x265   :  { %1779 = vrsqrt.f32 %v777_v19  ;;  %v780_v22 = vadd.f32 1e-05, %v776_v20  ;;  %v775_v23 = vmul.f32 0.125, %v764_v21 }
 0x266   :  { %v1770_v25 = vpop.eup %1769 }
 0x267   :  { %v548_v27 = vmul.f32 %v1770_v25, %v1937_v30  ;;  %1781 = vrsqrt.f32 %v780_v22  ;;  %v779_v28 = vadd.f32 1e-05, %v775_v23 }
 0x268   :  { %v1772_v29 = vpop.eup %1771 }
 0x269   :  { %1783 = vrsqrt.f32 %v779_v28  ;;  %v547_v33 = vmul.f32 %v1772_v29, %v1939_v32  ;;  %v556_v34 = vmul.f32 %v1456_v26, %v548_v27  ;;  %v44_v28 = vld [vmem:[%s2104_s4 + $0x20] sm:$0xff]  ;;  %v43_v29 = vld [vmem:[%s2104_s4 + $0x18] sm:$0xff] }
 0x26a   :  { %v1774_v35 = vpop.eup %1773 }
 0x26b   :  { %v550_v36 = vmul.f32 %v1774_v35, %v1945_v38  ;;  %v555_v37 = vmul.f32 %v1456_v26, %v547_v33  ;;  %v2001_v40 = vadd.f32 %v1457_v31, %v556_v34  ;;  %v41_v33 = vld [vmem:[%s2104_s4 + $0x8] sm:$0xff] }
 0x26c   :  { %v1776_v41 = vpop.eup %1775 }
 0x26d   :  { %v563_v42 = vadd.f32 %v1457_v31, %v555_v37  ;;  %v549_v30 = vmul.f32 %v1776_v41, %v1947_v39  ;;  %v558_v43 = vmul.f32 %v1456_v26, %v550_v36 }
 0x26f   :  { %1706 = vmatprep.mubr.msk.f32.mxu0 %vm328_vm2, %v563_v42  ;;  %v557_v44 = vmul.f32 %v1456_v26, %v549_v30  ;;  %v2005_v45 = vadd.f32 %v1457_v31, %v558_v43 }
 0x270   :  { %v1778_v47 = vpop.eup %1777 }
 0x271   :  { %v2007_v49 = vadd.f32 %v1457_v31, %v557_v44  ;;  %v786_v38 = vmul.f32 %v1778_v47, %v1959_v46  ;;  %v42_v31 = vld [vmem:[%s2104_s4 + $0x10] sm:$0xff] }
 0x272   :  { %v1780_v32 = vpop.eup %1779 }
 0x273   :  { %v785_v50 = vmul.f32 %v1780_v32, %v1963_v48  ;;  %v794_v60 = vmul.f32 %v1466_v52, %v786_v38  ;;  %v40_v32 = vld [vmem:[%s2104_s4] sm:$0xff] }
 0x274   :  { %v1782_v51 = vpop.eup %1781 }
 0x275   :  { %v793_v39 = vmul.f32 %v1466_v52, %v785_v50  ;;  %v788_v62 = vmul.f32 %v1782_v51, %v1972_v54  ;;  %v802_v46 = vadd.f32 %v1467_v56, %v794_v60 }
 0x276   :  { %v1784_v53 = vpop.eup %1783 }
 0x277   :  { %v801_v57 = vadd.f32 %v1467_v56, %v793_v39  ;;  %v787_v61 = vmul.f32 %v1784_v53, %v1975_v55  ;;  %v796_v0 = vmul.f32 %v1466_v52, %v788_v62 }
 0x279   :  { %805 = vxpose.xlu0.b32.start [1/2] (short) (narrow) %v801_v57, 40  ;;  %v795_v48 = vmul.f32 %v1466_v52, %v787_v61  ;;  %v804_v1 = vadd.f32 %v1467_v56, %v796_v0 }
 0x27b   :  { %v803_v63 = vadd.f32 %v1467_v56, %v795_v48 }
 0x27d   :  { %806 = vxpose.xlu0.b32.end [2/2] (short) (narrow) %v802_v46, 40  ;;  %1119 = vxpose.xlu1.b32.start [1/2] (short) (narrow) %v803_v63, 40 }
 0x281   :  { %1120 = vxpose.xlu1.b32.end [2/2] (short) (narrow) %v804_v1, 40 }
 0x2f5   :  { %v821_v2 = vpop.trf.xlu0 }
 0x2f6   :  { %1682 = vmatmul.mubr.msk.f32.vlgmr.msra.gmra.mxu1 %vm837_vm4, %v821_v2 }
 0x2f7   :  { %1723 = vmatpush3.msra.mxu1 %v1988_v58  ;;  %1684 = vmatprep.mubr.msk.f32.mxu1 %vm1786_vm3, %v1785_v24 }
 0x2f8   :  { %1724 = vmatprep.subr.mxu1 %v1785_v24 }
 0x2f9   :  { %1725 = vmatpush3.msra.mxu1 %v1990_v59  ;;  %v822_v54 = vpop.trf.xlu0  ;;  %v1135_v59 = vpop.trf.xlu1 }
 0x2fa   :  { %1685 = vmatmul.mubr.msk.f32.gmra.mxu1 %vm837_vm4, %v822_v54 }
 0x2fb   :  { %1687 = vmatprep.mubr.msk.f32.mxu1 %vm1786_vm3, %v1785_v24 }
 0x2fd   :  { %v823_v55 = vpop.trf.xlu0  ;;  %v1136_v4 = vpop.trf.xlu1 }
 0x2fe   :  { %1688 = vmatmul.mubr.msk.f32.gmra.mxu1 %vm837_vm4, %v823_v55 }
 0x2ff   :  { %1690 = vmatprep.mubr.msk.f32.mxu1 %vm1786_vm3, %v1785_v24 }
 0x301   :  { %v824_v58 = vpop.trf.xlu0  ;;  %v1137_v5 = vpop.trf.xlu1 }
 0x302   :  { %1691 = vmatmul.mubr.msk.f32.gmra.mxu1 %vm837_vm4, %v824_v58 }
 0x303   :  { %1693 = vmatprep.mubr.msk.f32.mxu1 %vm1786_vm3, %v1785_v24 }
 0x305   :  { %v825_v3 = vpop.trf.xlu0  ;;  %v1138_v6 = vpop.trf.xlu1 }
 0x306   :  { %1694 = vmatmul.mubr.msk.f32.gmra.mxu1 %vm837_vm4, %v825_v3 }
 0x307   :  { %1726 = vmatprep.mubr.msk.f32.mxu1 %vm1786_vm3, %v1785_v24 }
 0x309   :  { %v1139_v8 = vpop.trf.xlu1 }
 0x30a   :  { %1727 = vmatmul.mubr.msk.f32.vlgmr.msra.gmra.mxu1 %vm837_vm4, %v1135_v59 }
 0x30b   :  { %1729 = vmatprep.mubr.msk.f32.mxu1 %vm1786_vm3, %v1785_v24 }
 0x30e   :  { %1730 = vmatmul.mubr.msk.f32.gmra.mxu1 %vm837_vm4, %v1136_v4 }
 0x30f   :  { %1732 = vmatprep.mubr.msk.f32.mxu1 %vm1786_vm3, %v1785_v24 }
 0x312   :  { %1733 = vmatmul.mubr.msk.f32.gmra.mxu1 %vm837_vm4, %v1137_v5 }
 0x313   :  { %1735 = vmatprep.mubr.msk.f32.mxu1 %vm1786_vm3, %v1785_v24 }
 0x316   :  { %1736 = vmatmul.mubr.msk.f32.gmra.mxu1 %vm837_vm4, %v1138_v6 }
 0x317   :  { %1738 = vmatprep.mubr.msk.f32.mxu1 %vm1786_vm3, %v1785_v24 }
 0x31a   :  { %1739 = vmatmul.mubr.msk.f32.gmra.mxu1 %vm837_vm4, %v1139_v8 }
 0x3b6   :  { %v919_v13 = vpop.f32.mrf.mxu1 }
 0x3b7   :  { %v943_v27 = vmul.f32 %v919_v13, %v1890_v12 }
 0x3b8   :  { %v1683_v14 = vpop.f32.mrf.mxu1 }
 0x3ba   :  { %v924_v15 = vpop.f32.mrf.mxu1 }
 0x3bb   :  { %v944_v26 = vmul.f32 %v924_v15, %v1879_v11 }
 0x3bc   :  { %v1686_v16 = vpop.f32.mrf.mxu1 }
 0x3be   :  { %v929_v17 = vpop.f32.mrf.mxu1 }
 0x3bf   :  { %v945_v24 = vmul.f32 %v929_v17, %v1871_v10 }
 0x3c0   :  { %v1689_v18 = vpop.f32.mrf.mxu1 }
 0x3c2   :  { %v934_v19 = vpop.f32.mrf.mxu1 }
 0x3c3   :  { %v946_v25 = vmul.f32 %v934_v19, %v1862_v9 }
 0x3c4   :  { %v1692_v20 = vpop.f32.mrf.mxu1 }
 0x3c6   :  { %v939_v21 = vpop.f32.mrf.mxu1 }
 0x3c7   :  { %v947_v22 = vmul.f32 %v939_v21, %v1851_v7 }
 0x3c8   :  { %v1695_v23 = vpop.f32.mrf.mxu1 }
 0x3c9   :  { %1696 = vmatprep.subr.mxu0 %v947_v22 }
 0x3ca   :  { %1697 = vmatpush3.msra.mxu0 %v947_v22  ;;  %v1232_v34 = vpop.f32.mrf.mxu1 }
 0x3cb   :  { %1698 = vmatprep.subr.mxu0 %v946_v25  ;;  %v1256_v39 = vmul.f32 %v1232_v34, %v1890_v12 }
 0x3cc   :  { %1699 = vmatpush3.msra.mxu0 %v946_v25  ;;  %v1728_v35 = vpop.f32.mrf.mxu1 }
 0x3cd   :  { %1700 = vmatprep.subr.mxu0 %v945_v24 }
 0x3ce   :  { %1701 = vmatpush3.msra.mxu0 %v945_v24  ;;  %v1237_v36 = vpop.f32.mrf.mxu1 }
 0x3cf   :  { %1702 = vmatprep.subr.mxu0 %v944_v26  ;;  %v1257_v52 = vmul.f32 %v1237_v36, %v1879_v11 }
 0x3d0   :  { %1703 = vmatpush3.msra.mxu0 %v944_v26  ;;  %v1731_v37 = vpop.f32.mrf.mxu1 }
 0x3d1   :  { %1704 = vmatprep.subr.mxu0 %v943_v27 }
 0x3d2   :  { %1705 = vmatpush3.msra.mxu0 %v943_v27 }
 0x3d3   :  { %1707 = vmatmul.mubr.msk.f32.vlgmr.msra.gmra.mxu0 %vm328_vm2, %v2001_v40  ;;  %1709 = vmatprep.subr.mxu0 %v44_v28  ;;  %v1242_v40 = vpop.f32.mrf.mxu1 }
 0x3d4   :  { %1710 = vmatpush3.msra.mxu0 %v44_v28 }
 0x3d5   :  { %1711 = vmatprep.subr.mxu0 %v43_v29  ;;  %v1734_v41 = vpop.f32.mrf.mxu1 }
 0x3d6   :  { %1712 = vmatpush3.msra.mxu0 %v43_v29 }
 0x3d7   :  { %1713 = vmatprep.subr.mxu0 %v42_v31  ;;  %v1247_v42 = vpop.f32.mrf.mxu1 }
 0x3d8   :  { %1714 = vmatpush3.msra.mxu0 %v42_v31  ;;  %v1259_v51 = vmul.f32 %v1247_v42, %v1862_v9  ;;  %v1475_v9 = vld [vmem:[%s2105_s5] ss:$0 sm:$0xff] }
 0x3d9   :  { %1715 = vmatprep.subr.mxu0 %v41_v33  ;;  %v1737_v30 = vpop.f32.mrf.mxu1 }
 0x3da   :  { %1716 = vmatpush3.msra.mxu0 %v41_v33 }
 0x3db   :  { %v1252_v43 = vpop.f32.mrf.mxu1  ;;  %1717 = vmatprep.subr.mxu0 %v40_v32 }
 0x3dc   :  { %v1260_v44 = vmul.f32 %v1252_v43, %v1851_v7  ;;  %1718 = vmatpush3.msra.mxu0 %v40_v32  ;;  %v1258_v7 = vmul.f32 %v1242_v40, %v1871_v10 }
 0x3dd   :  { %v1740_v47 = vpop.f32.mrf.mxu1 }
 0x3de   :  { %1741 = vmatprep.subr.mxu0 %v1260_v44 }
 0x493   :  { %v1708_v50 = vpop.f32.mrf.mxu0 }
 0x495   :  { %v1020_v38 = vpop.f32.mrf.mxu0 }
 0x496   :  { %1719 = vmatprep.mubr.msk.f32.mxu0 %vm328_vm2, %v1020_v38 }
 0x497   :  { %1720 = vmatmul.mubr.msk.f32.vlgmr.msra.gmra.mxu0 %vm328_vm2, %v1708_v50 }
 0x498   :  { %1742 = vmatpush3.msra.mxu0 %v1260_v44  ;;  %1751 = vmatprep.mubr.msk.f32.mxu0 %vm328_vm2, %v2007_v49 }
 0x499   :  { %1743 = vmatprep.subr.mxu0 %v1259_v51 }
 0x49a   :  { %1744 = vmatpush3.msra.mxu0 %v1259_v51 }
 0x49b   :  { %1745 = vmatprep.subr.mxu0 %v1258_v7 }
 0x49c   :  { %1746 = vmatpush3.msra.mxu0 %v1258_v7 }
 0x49d   :  { %1747 = vmatprep.subr.mxu0 %v1257_v52 }
 0x49e   :  { %1748 = vmatpush3.msra.mxu0 %v1257_v52 }
 0x49f   :  { %1749 = vmatprep.subr.mxu0 %v1256_v39 }
 0x4a0   :  { %1750 = vmatpush3.msra.mxu0 %v1256_v39 }
 0x4a1   :  { %1752 = vmatmul.mubr.msk.f32.vlgmr.msra.gmra.mxu0 %vm328_vm2, %v2005_v45  ;;  %1754 = vmatprep.subr.mxu0 %v44_v28 }
 0x4a2   :  { %1755 = vmatpush3.msra.mxu0 %v44_v28 }
 0x4a3   :  { %1756 = vmatprep.subr.mxu0 %v43_v29 }
 0x4a4   :  { %1757 = vmatpush3.msra.mxu0 %v43_v29 }
 0x4a5   :  { %1758 = vmatprep.subr.mxu0 %v42_v31 }
 0x4a6   :  { %1759 = vmatpush3.msra.mxu0 %v42_v31 }
 0x4a7   :  { %1760 = vmatprep.subr.mxu0 %v41_v33 }
 0x4a8   :  { %1761 = vmatpush3.msra.mxu0 %v41_v33 }
 0x4a9   :  { %1762 = vmatprep.subr.mxu0 %v40_v32 }
 0x4aa   :  { %1763 = vmatpush3.msra.mxu0 %v40_v32 }
 0x557   :  { %v1721_v10 = vpop.f32.mrf.mxu0 }
 0x558   :  { %v1113_v11 = vadd.f32 %v1721_v10, %v1475_v9 }
 0x559   :  { %v1107_v12 = vpop.f32.mrf.mxu0 }
 0x55a   :  { %1118 = vst.msk [vmem:[%s2106_s6 + $0x8] sm:$0xff] %vm1116_vm5, %v1113_v11  ;;  %v1108_v45 = vadd.f32 %v1475_v9, %v1107_v12 }
 0x55c   :  { %1117 = vst.msk [vmem:[%s2106_s6] sm:$0xff] %vm1116_vm5, %v1108_v45 }
 0x561   :  { %v1753_v49 = vpop.f32.mrf.mxu0 }
 0x563   :  { %v1333_v53 = vpop.f32.mrf.mxu0 }
 0x564   :  { %1764 = vmatprep.mubr.msk.f32.mxu0 %vm328_vm2, %v1333_v53 }
 0x565   :  { %1765 = vmatmul.mubr.msk.f32.vlgmr.msra.gmra.mxu0 %vm328_vm2, %v1753_v49 }
 0x625   :  { %v1766_v56 = vpop.f32.mrf.mxu0 }
 0x626   :  { %v1420_v57 = vadd.f32 %v1766_v56, %v1475_v9 }
 0x627   :  { %v1414_v60 = vpop.f32.mrf.mxu0 }
 0x628   :  { %1424 = vst.msk [vmem:[%s2106_s6 + $0x18] sm:$0xff] %vm1116_vm5, %v1420_v57  ;;  %v1415_v61 = vadd.f32 %v1475_v9, %v1414_v60 }
 0x62a   :  { %1423 = vst.msk [vmem:[%s2106_s6 + $0x10] sm:$0xff] %vm1116_vm5, %v1415_v61 }

</bundles_post_ra>
